<compile_context>
chip_gen: v7x
topology: tpu7x:2x2x1
jax: 0.10.0
libtpu: 0.0.40
codegen_flags: <defaults>
</compile_context>

<pallas_src>
import math

import jax
import jax.numpy as jnp
from jax.experimental import pallas as pl
from jax.experimental.pallas import tpu as pltpu


def _round_up(n, m):
    return ((n + m - 1) // m) * m


def _make_fused_mlp_kernel(num_layers, prelu_alphas, col_widths, out_dim):
    """Kernel computing the whole MLP for one batch tile.

    prelu_alphas: per-layer Python float slope (compile-time constant) or None.
    col_widths:   padded output width of each layer (width of the value `y`).
    out_dim:      true (un-padded) output width stored to HBM.
    """

    def kernel(x_ref, b_ref, *refs):
        w_refs = refs[:num_layers]
        out_ref = refs[num_layers]
        b_all = b_ref[...]                               # (L, max_pad) f32, tiny
        h = x_ref[...]                                   # (TB, din) original dtype
        for l in range(num_layers):                      # unrolled at trace time
            w = w_refs[l][...]
            # MXU matmul, f32 accumulation; cast of h happens in-VMEM (vregs).
            y = jnp.dot(h.astype(w.dtype), w,
                        preferred_element_type=jnp.float32)
            y = y + b_all[l:l + 1, :col_widths[l]]       # folded Linear+BN bias
            a = prelu_alphas[l]
            if a is not None:                            # PReLU, shared slope
                y = jnp.where(y >= 0.0, y, jnp.float32(a) * y)
            h = y
        # Store only the true output columns (narrow, no 128-lane slab).
        out_ref[...] = h[:, :out_dim].astype(out_ref.dtype)

    return kernel


def prepare_mlp_params(params, *, use_bf16_matmul=False):
    """One-time padding / casting of parameters (hoisted out of the hot path).

    params: list of dicts with keys
              'w'     (Din, Dout) float32, BatchNorm already folded in,
              'b'     (Dout,)     float32, BatchNorm already folded in,
              'alpha' Python float PReLU slope, or None for the output Linear.
    """
    num_layers = len(params)
    assert num_layers >= 1
    mm_dtype = jnp.bfloat16 if use_bf16_matmul else jnp.float32

    din = int(params[0]["w"].shape[0])
    dims = [din] + [int(p["w"].shape[1]) for p in params]
    # Layer-0 K dim stays at din (x streamed un-padded); hidden/output widths
    # are lane-padded to 128 inside the kernel.
    dims_pad = [din] + [_round_up(d, 128) for d in dims[1:]]
    max_pad = max(dims_pad[1:])

    ws, b_rows = [], []
    for l, p in enumerate(params):
        d_in, d_out = int(p["w"].shape[0]), int(p["w"].shape[1])
        a = p["alpha"]
        assert a is None or isinstance(a, (int, float)), (
            "only shared-slope PReLU (num_parameters=1) is supported")
        w_p = jnp.zeros((dims_pad[l], dims_pad[l + 1]), mm_dtype)
        w_p = w_p.at[:d_in, :d_out].set(p["w"].astype(mm_dtype))
        b_row = jnp.zeros((max_pad,), jnp.float32)
        b_row = b_row.at[:d_out].set(p["b"].astype(jnp.float32))
        ws.append(w_p)
        b_rows.append(b_row)

    return dict(
        ws=ws,
        b_stack=jnp.stack(b_rows, axis=0),               # (L, max_pad) f32
        dims=dims,
        dims_pad=dims_pad,
        max_pad=max_pad,
        alphas=tuple(None if p["alpha"] is None else float(p["alpha"])
                     for p in params),
    )


def mlp_prelu_forward(x, prepared, *, batch_tile=1024):
    """Eval-mode forward of MultiLayerPerceptronPrelu.

    x:        (B, input_dim) array (f32; streamed as-is, no feature padding).
    prepared: output of prepare_mlp_params().
    Returns (B, out_dim) float32 (out_dim == 1 when output_layer=True).
    """
    ws = prepared["ws"]
    b_stack = prepared["b_stack"]
    dims = prepared["dims"]
    dims_pad = prepared["dims_pad"]
    max_pad = prepared["max_pad"]
    alphas = prepared["alphas"]
    num_layers = len(ws)

    B, din = x.shape
    assert din == dims[0]
    out_dim = dims[-1]

    # ---- batch tiling: pad rows to a tile multiple; keep >= 2 grid steps ------
    b_pad = _round_up(max(B, 8), 8)
    tb = _round_up(min(int(batch_tile), b_pad), 8)
    if b_pad // tb < 2 and b_pad >= 16:       # v7x: 2 TCs want >= 2 grid steps
        tb = _round_up(pl.cdiv(b_pad, 2), 8)
    b_pad = _round_up(b_pad, tb)

    if b_pad != B:
        x_p = jnp.zeros((b_pad, din), x.dtype).at[:B, :].set(x)
    else:
        x_p = x                                           # zero-copy fast path

    # ---- BlockSpecs: batch-tiled x/out; params VMEM-resident (constant maps) --
    in_specs = [
        pl.BlockSpec((tb, din), lambda i: (i, 0)),                 # x tile
        pl.BlockSpec((num_layers, max_pad), lambda i: (0, 0)),     # bias stack
    ]
    for l in range(num_layers):
        in_specs.append(pl.BlockSpec(ws[l].shape, lambda i: (0, 0)))
    out_spec = pl.BlockSpec((tb, out_dim), lambda i: (i, 0))

    kernel = _make_fused_mlp_kernel(num_layers, alphas,
                                    tuple(dims_pad[1:]), out_dim)

    # ---- VMEM budget (double buffers + weights + intermediates headroom) ------
    est = 2 * tb * din * x.dtype.itemsize
    est += 2 * tb * out_dim * 4
    est += 2 * int(b_stack.size) * 4
    for w in ws:
        est += 2 * int(w.size) * jnp.dtype(w.dtype).itemsize
    est += 4 * tb * max_pad * 4
    vmem_limit = int(min(max(2 * est, 32 * 1024 * 1024), 64 * 1024 * 1024))

    out = pl.pallas_call(
        kernel,
        out_shape=jax.ShapeDtypeStruct((b_pad, out_dim), jnp.float32),
        grid_spec=pl.GridSpec(
            grid=(b_pad // tb,),
            in_specs=in_specs,
            out_specs=out_spec,
        ),
        compiler_params=pltpu.CompilerParams(
            dimension_semantics=("parallel",),   # megacore-shardable (v7x: 2 TCs)
            vmem_limit_bytes=vmem_limit,
        ),
    )(x_p, b_stack, *ws)

    return out[:B] if b_pad != B else out


# ----------------------------------------------------------------------------
# Deterministic parameter construction (mirrors the PyTorch __init__), with the
# eval-mode BatchNorm1d fold applied:  y = (xW + b) * scale + shift
#                                        = x (W*scale) + (b*scale + shift).
# ----------------------------------------------------------------------------
def init_mlp_params(key, input_dim, embed_dims, output_layer=True):
    params = []
    dim = input_dim
    bn_eps = 1e-5
    for embed_dim in embed_dims:
        key, kw, kb = jax.random.split(key, 3)
        # nn.init.xavier_uniform_ on torch weight (out, in); stored here as (in, out).
        bound_w = math.sqrt(6.0 / (dim + embed_dim))
        w = jax.random.uniform(kw, (dim, embed_dim), jnp.float32, -bound_w, bound_w)
        # torch Linear default bias init: U(-1/sqrt(fan_in), 1/sqrt(fan_in))
        bound_b = 1.0 / math.sqrt(dim)
        b = jax.random.uniform(kb, (embed_dim,), jnp.float32, -bound_b, bound_b)
        # BatchNorm1d (eval): gamma=1, beta=0, running_mean=0, running_var=1
        gamma = jnp.ones((embed_dim,), jnp.float32)
        beta = jnp.zeros((embed_dim,), jnp.float32)
        run_mean = jnp.zeros((embed_dim,), jnp.float32)
        run_var = jnp.ones((embed_dim,), jnp.float32)
        scale = gamma / jnp.sqrt(run_var + bn_eps)
        shift = beta - run_mean * scale
        # Fold eval-mode BN into the Linear.
        w = w * scale[None, :]
        b = b * scale + shift
        params.append(dict(w=w, b=b, alpha=0.25))   # nn.PReLU() default shared slope
        dim = embed_dim
    if output_layer:
        key, kw, kb = jax.random.split(key, 3)
        bound_w = math.sqrt(6.0 / (dim + 1))
        w = jax.random.uniform(kw, (dim, 1), jnp.float32, -bound_w, bound_w)
        bound_b = 1.0 / math.sqrt(dim)
        b = jax.random.uniform(kb, (1,), jnp.float32, -bound_b, bound_b)
        params.append(dict(w=w, b=b, alpha=None))   # plain Linear head, no PReLU
    return params


def reference_forward(x, params):
    """Pure-JAX reference (same folded params) for verification."""
    h = x.astype(jnp.float32)
    for p in params:
        y = h @ p["w"] + p["b"]
        if p["alpha"] is not None:
            y = jnp.where(y >= 0.0, y, jnp.float32(p["alpha"]) * y)
        h = y
    return h


if __name__ == "__main__":
    key = jax.random.PRNGKey(0)
    k_x, k_p = jax.random.split(key)

    B = 8
    input_dim = 64          # flattened C*H*W features
    embed_dims = (32, 16)

    x = jax.random.normal(k_x, (B, input_dim), jnp.float32)
    params = init_mlp_params(k_p, input_dim, embed_dims, output_layer=True)
    ref = reference_forward(x, params)

    # Exact-semantics f32 path (matches PyTorch eval-mode numerics).
    prepared = prepare_mlp_params(params)
    out = jax.block_until_ready(mlp_prelu_forward(x, prepared))
    assert out.shape == (B, 1), out.shape
    assert jnp.allclose(out, ref, atol=1e-5, rtol=1e-5), (
        float(jnp.max(jnp.abs(out - ref))))

    # bf16-input / f32-accumulate MXU path (throughput option on v5e/v6e/v7x).
    prepared_bf16 = prepare_mlp_params(params, use_bf16_matmul=True)
    out_bf16 = jax.block_until_ready(mlp_prelu_forward(x, prepared_bf16))
    assert out_bf16.shape == (B, 1), out_bf16.shape
    assert jnp.allclose(out_bf16, ref, atol=1e-1, rtol=1e-1), (
        float(jnp.max(jnp.abs(out_bf16 - ref))))

    # Multi-step grid + batch-padding path (exercises >=2 grid steps / row pad).
    B2 = 40
    x2 = jax.random.normal(k_x, (B2, input_dim), jnp.float32)
    ref2 = reference_forward(x2, params)
    out2 = jax.block_until_ready(mlp_prelu_forward(x2, prepared, batch_tile=16))
    assert out2.shape == (B2, 1), out2.shape
    assert jnp.allclose(out2, ref2, atol=1e-5, rtol=1e-5), (
        float(jnp.max(jnp.abs(out2 - ref2))))

    print("KERNEL_OK")
</pallas_src>

<mosaic_0001>
module attributes {stable_mosaic.version = 11 : i64} {
  func.func @kernel(%arg0: i32, %arg1: memref<8x64xf32, #tpu.memory_space<vmem>>, %arg2: memref<3x128xf32, #tpu.memory_space<vmem>>, %arg3: memref<64x128xf32, #tpu.memory_space<vmem>>, %arg4: memref<128x128xf32, #tpu.memory_space<vmem>>, %arg5: memref<128x128xf32, #tpu.memory_space<vmem>>, %arg6: memref<8x1xf32, #tpu.memory_space<vmem>>) attributes {dimension_semantics = [#tpu.dimension_semantics<parallel>], iteration_bounds = array<i64: 1>, scalar_prefetch = 0 : i64, scratch_operands = 0 : i64, tpu.core_type = #tpu.core_type<tc>, window_params = [{transform_indices = @transform_0, window_bounds = array<i64: 8, 64>}, {pipeline_mode = #tpu.pipeline_mode<synchronous>, transform_indices = @transform_1, window_bounds = array<i64: 3, 128>}, {pipeline_mode = #tpu.pipeline_mode<synchronous>, transform_indices = @transform_2, window_bounds = array<i64: 64, 128>}, {pipeline_mode = #tpu.pipeline_mode<synchronous>, transform_indices = @transform_3, window_bounds = array<i64: 128, 128>}, {pipeline_mode = #tpu.pipeline_mode<synchronous>, transform_indices = @transform_4, window_bounds = array<i64: 128, 128>}, {transform_indices = @transform_5, window_bounds = array<i64: 8, 1>}]} {
    %c0 = arith.constant 0 : index
    %c0_0 = arith.constant 0 : index
    %0 = vector.load %arg2[%c0, %c0_0] : memref<3x128xf32, #tpu.memory_space<vmem>>, vector<3x128xf32>
    %c0_1 = arith.constant 0 : index
    %c0_2 = arith.constant 0 : index
    %1 = vector.load %arg1[%c0_1, %c0_2] : memref<8x64xf32, #tpu.memory_space<vmem>>, vector<8x64xf32>
    %c0_3 = arith.constant 0 : index
    %c0_4 = arith.constant 0 : index
    %2 = vector.load %arg3[%c0_3, %c0_4] : memref<64x128xf32, #tpu.memory_space<vmem>>, vector<64x128xf32>
    %cst = arith.constant dense<0.000000e+00> : vector<8x128xf32>
    %3 = tpu.matmul %1, %2, %cst {dimension_numbers = #tpu.dot_dimension_numbers<[1], [0], [0], [1], [0, 0, 1, 1], [], []>} : vector<8x64xf32>, vector<64x128xf32>, vector<8x128xf32> -> vector<8x128xf32>
    %4 = vector.extract_strided_slice %0 {offsets = [0, 0], sizes = [1, 128], strides = [1, 1]} : vector<3x128xf32> to vector<1x128xf32>
    %5 = vector.broadcast %4 : vector<1x128xf32> to vector<8x128xf32>
    %6 = arith.addf %3, %5 : vector<8x128xf32>
    %cst_5 = arith.constant 0.000000e+00 : f32
    %7 = vector.broadcast %cst_5 : f32 to vector<8x128xf32>
    %8 = arith.cmpf oge, %6, %7 : vector<8x128xf32>
    %cst_6 = arith.constant 2.500000e-01 : f32
    %9 = vector.broadcast %cst_6 : f32 to vector<8x128xf32>
    %10 = arith.mulf %9, %6 : vector<8x128xf32>
    %11 = arith.select %8, %6, %10 : vector<8x128xi1>, vector<8x128xf32>
    %c0_7 = arith.constant 0 : index
    %c0_8 = arith.constant 0 : index
    %12 = vector.load %arg4[%c0_7, %c0_8] : memref<128x128xf32, #tpu.memory_space<vmem>>, vector<128x128xf32>
    %cst_9 = arith.constant dense<0.000000e+00> : vector<8x128xf32>
    %13 = tpu.matmul %11, %12, %cst_9 {dimension_numbers = #tpu.dot_dimension_numbers<[1], [0], [0], [1], [0, 0, 1, 1], [], []>} : vector<8x128xf32>, vector<128x128xf32>, vector<8x128xf32> -> vector<8x128xf32>
    %14 = vector.extract_strided_slice %0 {offsets = [1, 0], sizes = [1, 128], strides = [1, 1]} : vector<3x128xf32> to vector<1x128xf32>
    %15 = vector.broadcast %14 : vector<1x128xf32> to vector<8x128xf32>
    %16 = arith.addf %13, %15 : vector<8x128xf32>
    %cst_10 = arith.constant 0.000000e+00 : f32
    %17 = vector.broadcast %cst_10 : f32 to vector<8x128xf32>
    %18 = arith.cmpf oge, %16, %17 : vector<8x128xf32>
    %cst_11 = arith.constant 2.500000e-01 : f32
    %19 = vector.broadcast %cst_11 : f32 to vector<8x128xf32>
    %20 = arith.mulf %19, %16 : vector<8x128xf32>
    %21 = arith.select %18, %16, %20 : vector<8x128xi1>, vector<8x128xf32>
    %c0_12 = arith.constant 0 : index
    %c0_13 = arith.constant 0 : index
    %22 = vector.load %arg5[%c0_12, %c0_13] : memref<128x128xf32, #tpu.memory_space<vmem>>, vector<128x128xf32>
    %cst_14 = arith.constant dense<0.000000e+00> : vector<8x128xf32>
    %23 = tpu.matmul %21, %22, %cst_14 {dimension_numbers = #tpu.dot_dimension_numbers<[1], [0], [0], [1], [0, 0, 1, 1], [], []>} : vector<8x128xf32>, vector<128x128xf32>, vector<8x128xf32> -> vector<8x128xf32>
    %24 = vector.extract_strided_slice %0 {offsets = [2, 0], sizes = [1, 128], strides = [1, 1]} : vector<3x128xf32> to vector<1x128xf32>
    %25 = vector.broadcast %24 : vector<1x128xf32> to vector<8x128xf32>
    %26 = arith.addf %23, %25 : vector<8x128xf32>
    %27 = vector.extract_strided_slice %26 {offsets = [0, 0], sizes = [8, 1], strides = [1, 1]} : vector<8x128xf32> to vector<8x1xf32>
    %c0_15 = arith.constant 0 : index
    %c0_16 = arith.constant 0 : index
    %28 = vector.load %arg6[%c0_15, %c0_16] : memref<8x1xf32, #tpu.memory_space<vmem>>, vector<8x1xf32>
    tpu.vector_store %arg6[%c0_15, %c0_16], %27 {strides = array<i32>} : memref<8x1xf32, #tpu.memory_space<vmem>>, vector<8x1xf32>,
    return
  }
  func.func @transform_0(%arg0: i32) -> (i32, i32) {
    %c0_i32 = arith.constant 0 : i32
    %c0_i32_0 = arith.constant 0 : i32
    return %arg0, %c0_i32 : i32, i32
  }
  func.func @transform_1(%arg0: i32) -> (i32, i32) {
    %c0_i32 = arith.constant 0 : i32
    %c0_i32_0 = arith.constant 0 : i32
    %c0_i32_1 = arith.constant 0 : i32
    return %c0_i32, %c0_i32_0 : i32, i32
  }
  func.func @transform_2(%arg0: i32) -> (i32, i32) {
    %c0_i32 = arith.constant 0 : i32
    %c0_i32_0 = arith.constant 0 : i32
    %c0_i32_1 = arith.constant 0 : i32
    return %c0_i32, %c0_i32_0 : i32, i32
  }
  func.func @transform_3(%arg0: i32) -> (i32, i32) {
    %c0_i32 = arith.constant 0 : i32
    %c0_i32_0 = arith.constant 0 : i32
    %c0_i32_1 = arith.constant 0 : i32
    return %c0_i32, %c0_i32_0 : i32, i32
  }
  func.func @transform_4(%arg0: i32) -> (i32, i32) {
    %c0_i32 = arith.constant 0 : i32
    %c0_i32_0 = arith.constant 0 : i32
    %c0_i32_1 = arith.constant 0 : i32
    return %c0_i32, %c0_i32_0 : i32, i32
  }
  func.func @transform_5(%arg0: i32) -> (i32, i32) {
    %c0_i32 = arith.constant 0 : i32
    %c0_i32_0 = arith.constant 0 : i32
    return %arg0, %c0_i32 : i32, i32
  }
}

</mosaic_0001>

<bundles_post_ra>
// kernel: tpu_custom_call.1
= control target key start
LH: loop header
LB: loop body
LE: loop exit
PB: predicated region body
PF: predicated region fallthrough
CT: control target
= control target key end

     0   :  { %10 = vsyncpa [#allocation3], 0  ;;  %s821_s0 = inlined_call_operand.hbm [shape: f32[8,64], index: 0, kind: input, shape index: {}]   ;;  %s822_s1 = inlined_call_operand.hbm [shape: f32[3,128], index: 1, kind: input, shape index: {}]   ;;  %s823_s2 = inlined_call_operand.hbm [shape: f32[64,128], index: 2, kind: input, shape index: {}]   ;;  %s824_s3 = inlined_call_operand.hbm [shape: f32[128,128], index: 3, kind: input, shape index: {}]   ;;  %s825_s4 = inlined_call_operand.hbm [shape: f32[128,128], index: 4, kind: input, shape index: {}]   ;;  %s826_s5 = inlined_call_operand.vmem [shape: f32[8,1], index: 5, kind: output, shape index: {}]  }
   0x1   :  { %11 = vsyncpa [#allocation5], 0 }
   0x2   :  { %12 = vsyncpa [#allocation8], 0  ;;  %s686_s18 = smov [#allocation4]   ;;  %s570_s22 = scalar_lea.hbm %s822_s1, 64 }
   0x3   :  { %s29_s19 = sshll.u32 %s686_s18, 4  ;;  %p571_p0 = scmp.ne.s32.totalorder %s822_s1, %s570_s22  ;;  %s30_s19 = int_to_ptr.vmem [resolvable:$true] %s29_s19 }
   0x4   :  { %p574_p1 = scmp.lt.u32.totalorder %s570_s22, %s822_s1 }
   0x6   :  { %p576_p2 = pnand %p574_p1, %p571_p0 }
   0x8   :  { %579 = shalt.err (!%p576_p2)
}
   0x9   :  { %s580_s27 = scalar_lea.vmem %s30_s19, 64  ;;  %p585_p4 = scmp.lt.s32.totalorder %s30_s19, %s30_s19 }
   0xa   :  { %p581_p3 = scmp.ne.s32.totalorder %s30_s19, %s580_s27  ;;  %p586_p5 = scmp.lt.s32.totalorder %s580_s27, %s580_s27 }
   0xc   :  { %p587_p6 = por %p586_p5, %p585_p4 }
   0xe   :  { %p588_p7 = pnand %p587_p6, %p581_p3 }
  0x10   :  { %591 = shalt.err (!%p588_p7)
}
  0x11   :  { %32 = dma.hbm_to_vmem [thread:$0]  %s822_s1, 64, %s30_s19, [#allocation5]  }
  0x12   :  { %s687_s30 = smov [#allocation7]   ;;  %s688_s7 = smov [#allocation2]  }
  0x13   :  { %s50_s6 = sshll.u32 %s687_s30, 4  ;;  %s19_s8 = sshll.u32 %s688_s7, 4  ;;  %s51_s6 = int_to_ptr.vmem [resolvable:$true] %s50_s6  ;;  %s20_s8 = int_to_ptr.vmem [resolvable:$true] %s19_s8 }
  0x14   :  { %s592_s11 = scalar_lea.hbm %s824_s3, 2048 }
  0x15   :  { %p593_p8 = scmp.ne.s32.totalorder %s824_s3, %s592_s11  ;;  %p596_p9 = scmp.lt.u32.totalorder %s592_s11, %s824_s3 }
  0x17   :  { %p598_p10 = pnand %p596_p9, %p593_p8 }
  0x19   :  { %601 = shalt.err (!%p598_p10)
}
  0x1a   :  { %s602_s1 = scalar_lea.vmem %s51_s6, 2048  ;;  %p607_p12 = scmp.lt.s32.totalorder %s51_s6, %s51_s6 }
  0x1b   :  { %p603_p11 = scmp.ne.s32.totalorder %s51_s6, %s602_s1  ;;  %p608_p13 = scmp.lt.s32.totalorder %s602_s1, %s602_s1 }
  0x1d   :  { %p609_p0 = por %p608_p13, %p607_p12 }
  0x1f   :  { %p610_p1 = pnand %p609_p0, %p603_p11 }
  0x21   :  { %613 = shalt.err (!%p610_p1)
}
  0x22   :  { %s689_s16 = smov 128   ;;  %s690_s17 = smov 8  }
  0x23   :  { %56 = dma.hbm_to_vmem [thread:$0]  %s824_s3, 2048, %s51_s6, [#allocation8], %s689_s16, %s689_s16, %s690_s17  }
  0x24   :  { %s614_s22 = scalar_lea.hbm %s821_s0, 128 }
  0x25   :  { %p615_p2 = scmp.ne.s32.totalorder %s821_s0, %s614_s22  ;;  %p618_p3 = scmp.lt.u32.totalorder %s614_s22, %s821_s0 }
  0x27   :  { %p620_p4 = pnand %p618_p3, %p615_p2 }
  0x29   :  { %623 = shalt.err (!%p620_p4)
}
  0x2a   :  { %s624_s27 = scalar_lea.vmem %s20_s8, 128  ;;  %p629_p6 = scmp.lt.s32.totalorder %s20_s8, %s20_s8 }
  0x2b   :  { %p625_p5 = scmp.ne.s32.totalorder %s20_s8, %s624_s27  ;;  %p630_p7 = scmp.lt.s32.totalorder %s624_s27, %s624_s27 }
  0x2d   :  { %p631_p8 = por %p630_p7, %p629_p6 }
  0x2f   :  { %p632_p9 = pnand %p631_p8, %p625_p5 }
  0x31   :  { %635 = shalt.err (!%p632_p9)
}
  0x32   :  { %22 = dma.hbm_to_vmem [thread:$0]  %s821_s0, 128, %s20_s8, [#allocation3]  }
  0x33   :  { %s691_s29 = smov [#allocation6]   ;;  %s692_s6 = smov [#allocation9]  }
  0x34   :  { %s38_s30 = sshll.u32 %s691_s29, 4  ;;  %s62_s7 = sshll.u32 %s692_s6, 4  ;;  %s39_s30 = int_to_ptr.vmem [resolvable:$true] %s38_s30  ;;  %s63_s7 = int_to_ptr.vmem [resolvable:$true] %s62_s7 }
  0x35   :  { %s636_s11 = scalar_lea.hbm %s823_s2, 1024 }
  0x36   :  { %p637_p10 = scmp.ne.s32.totalorder %s823_s2, %s636_s11  ;;  %p640_p11 = scmp.lt.u32.totalorder %s636_s11, %s823_s2 }
  0x38   :  { %p642_p12 = pnand %p640_p11, %p637_p10 }
  0x3a   :  { %645 = shalt.err (!%p642_p12)
}
  0x3b   :  { %s646_s0 = scalar_lea.vmem %s39_s30, 1024  ;;  %p651_p0 = scmp.lt.s32.totalorder %s39_s30, %s39_s30 }
  0x3c   :  { %p647_p13 = scmp.ne.s32.totalorder %s39_s30, %s646_s0  ;;  %p652_p1 = scmp.lt.s32.totalorder %s646_s0, %s646_s0 }
  0x3e   :  { %p653_p2 = por %p652_p1, %p651_p0 }
  0x40   :  { %p654_p3 = pnand %p653_p2, %p647_p13 }
  0x42   :  { %657 = shalt.err (!%p654_p3)
}
  0x43   :  { %44 = dma.hbm_to_vmem [thread:$0]  %s823_s2, 1024, %s39_s30, [#allocation5], %s689_s16, %s689_s16, %s690_s17  }
  0x44   :  { %s658_s20 = scalar_lea.hbm %s825_s4, 2048 }
  0x45   :  { %p659_p4 = scmp.ne.s32.totalorder %s825_s4, %s658_s20  ;;  %p662_p5 = scmp.lt.u32.totalorder %s658_s20, %s825_s4 }
  0x47   :  { %p664_p6 = pnand %p662_p5, %p659_p4 }
  0x49   :  { %667 = shalt.err (!%p664_p6)
}
  0x4a   :  { %s668_s25 = scalar_lea.vmem %s63_s7, 2048  ;;  %p673_p8 = scmp.lt.s32.totalorder %s63_s7, %s63_s7 }
  0x4b   :  { %p669_p7 = scmp.ne.s32.totalorder %s63_s7, %s668_s25  ;;  %p674_p9 = scmp.lt.s32.totalorder %s668_s25, %s668_s25 }
  0x4d   :  { %p675_p10 = por %p674_p9, %p673_p8 }
  0x4f   :  { %p676_p11 = pnand %p675_p10, %p669_p7 }
  0x51   :  { %679 = shalt.err (!%p676_p11)
}
  0x52   :  { %68 = dma.hbm_to_vmem [thread:$0]  %s825_s4, 2048, %s63_s7, [#allocation8], %s689_s16, %s689_s16, %s690_s17  }
  0x53   :  { %680 = dma.done.wait [#allocation3], 128  }
  0x54   :  { %681 = vsyncadd [#allocation3], 4294967168 }
  0x55   :  { %682 = dma.done.wait [#allocation5], 1088  }
  0x56   :  { %683 = vsyncadd [#allocation5], 4294966208 }
  0x57   :  { %684 = dma.done.wait [#allocation8], 4096  }
  0x58   :  { %685 = vsyncadd [#allocation8], 4294963200  ;;  %v693_v0 = vmov 0.0|0.0   ;;  %vm694_vm0 = vmmov 0   ;;  %v695_v1 = vmov 0.0   ;;  %v86_v2 = vld [vmem:[#allocation6] sm:$0xff]  ;;  %v94_v60 = vlaneseq }
  0x59   :  { %500 = vmatprep.subr.bf16.mxu0 %v693_v0  ;;  %427 = vmatprep.mubr.msk.f32.mxu0 %vm694_vm0, %v695_v1  ;;  %v87_v3 = vld [vmem:[#allocation6 + $0x8] sm:$0xff]  ;;  %v88_v4 = vld [vmem:[#allocation6 + $0x10] sm:$0xff]  ;;  %v89_v6 = vld [vmem:[#allocation6 + $0x18] sm:$0xff]  ;;  %vm98_vm1 = vcmask 523264   ;;  %vm358_vm4 = vcmask 7168  }
  0x5a   :  { %512 = vmatprep.subr.bf16.mxu1 %v693_v0  ;;  %462 = vmatprep.mubr.msk.f32.mxu1 %vm694_vm0, %v695_v1  ;;  %v501_v5 = vpack.c.bf16 %v87_v3, %v86_v2  ;;  %v504_v7 = vpack.c.bf16 %v89_v6, %v88_v4  ;;  %v175_v8 = vld [vmem:[#allocation7] sm:$0xff]  ;;  %v176_v9 = vld [vmem:[#allocation7 + $0x8] sm:$0xff]  ;;  %v177_v10 = vld [vmem:[#allocation7 + $0x10] sm:$0xff]  ;;  %v95_v61 = vshrl.u32 %v94_v60, 7 }
  0x5b   :  { %v90_v11 = vld [vmem:[#allocation6 + $0x20] sm:$0xff]  ;;  %v91_v12 = vld [vmem:[#allocation6 + $0x28] sm:$0xff]  ;;  %v513_v13 = vpack.c.bf16 %v176_v9, %v175_v8  ;;  %v178_v14 = vld [vmem:[#allocation7 + $0x18] sm:$0xff] }
  0x5c   :  { %502 = vmatpush3.bf16.msra.mxu0 %v501_v5  ;;  %v516_v15 = vpack.c.bf16 %v178_v14, %v177_v10  ;;  %v507_v16 = vpack.c.bf16 %v91_v12, %v90_v11  ;;  %v179_v17 = vld [vmem:[#allocation7 + $0x20] sm:$0xff]  ;;  %v180_v18 = vld [vmem:[#allocation7 + $0x28] sm:$0xff]  ;;  %v92_v19 = vld [vmem:[#allocation6 + $0x30] sm:$0xff]  ;;  %v96_v62 = vsub.s32 0, %v95_v61  ;;  %v193_v10 = vsub.s32 1, %v95_v61 }
  0x5d   :  { %503 = vmatprep.subr.bf16.mxu0 %v693_v0  ;;  %514 = vmatpush3.bf16.msra.mxu1 %v513_v13  ;;  %v93_v20 = vld [vmem:[#allocation6 + $0x38] sm:$0xff]  ;;  %v519_v21 = vpack.c.bf16 %v180_v18, %v179_v17  ;;  %v181_v23 = vld [vmem:[#allocation7 + $0x30] sm:$0xff]  ;;  %v183_v27 = vld [vmem:[#allocation7 + $0x40] sm:$0xff] }
  0x5e   :  { %515 = vmatprep.subr.bf16.mxu1 %v693_v0  ;;  %v510_v22 = vpack.c.bf16 %v93_v20, %v92_v19  ;;  %v182_v24 = vld [vmem:[#allocation7 + $0x38] sm:$0xff]  ;;  %v184_v28 = vld [vmem:[#allocation7 + $0x48] sm:$0xff]  ;;  %v185_v30 = vld [vmem:[#allocation7 + $0x50] sm:$0xff] }
  0x5f   :  { %v522_v25 = vpack.c.bf16 %v182_v24, %v181_v23  ;;  %v85_v26 = vld [vmem:[#allocation2] sm:$0xff]  ;;  %v525_v29 = vpack.c.bf16 %v184_v28, %v183_v27  ;;  %v187_v33 = vld [vmem:[#allocation7 + $0x60] sm:$0xff]  ;;  %v188_v34 = vld [vmem:[#allocation7 + $0x68] sm:$0xff] }
  0x60   :  { %505 = vmatpush3.bf16.msra.mxu0 %v504_v7  ;;  %v186_v31 = vld [vmem:[#allocation7 + $0x58] sm:$0xff]  ;;  %v531_v35 = vpack.c.bf16 %v188_v34, %v187_v33  ;;  %v189_v36 = vld [vmem:[#allocation7 + $0x70] sm:$0xff]  ;;  %v268_v39 = vld [vmem:[#allocation9] sm:$0xff] }
  0x61   :  { %506 = vmatprep.subr.bf16.mxu0 %v693_v0  ;;  %517 = vmatpush3.bf16.msra.mxu1 %v516_v15  ;;  %v528_v32 = vpack.c.bf16 %v186_v31, %v185_v30  ;;  %v190_v37 = vld [vmem:[#allocation7 + $0x78] sm:$0xff]  ;;  %v269_v40 = vld [vmem:[#allocation9 + $0x8] sm:$0xff]  ;;  %v270_v41 = vld [vmem:[#allocation9 + $0x10] sm:$0xff] }
  0x62   :  { %518 = vmatprep.subr.bf16.mxu1 %v693_v0  ;;  %v534_v38 = vpack.c.bf16 %v190_v37, %v189_v36  ;;  %v537_v42 = vpack.c.bf16 %v269_v40, %v268_v39  ;;  %v271_v43 = vld [vmem:[#allocation9 + $0x18] sm:$0xff]  ;;  %v272_v45 = vld [vmem:[#allocation9 + $0x20] sm:$0xff]  ;;  %v273_v46 = vld [vmem:[#allocation9 + $0x28] sm:$0xff] }
  0x63   :  { %v540_v44 = vpack.c.bf16 %v271_v43, %v270_v41  ;;  %v543_v47 = vpack.c.bf16 %v273_v46, %v272_v45  ;;  %v274_v48 = vld [vmem:[#allocation9 + $0x30] sm:$0xff]  ;;  %v275_v49 = vld [vmem:[#allocation9 + $0x38] sm:$0xff]  ;;  %v276_v51 = vld [vmem:[#allocation9 + $0x40] sm:$0xff] }
  0x64   :  { %508 = vmatpush3.bf16.msra.mxu0 %v507_v16  ;;  %v546_v50 = vpack.c.bf16 %v275_v49, %v274_v48  ;;  %v277_v52 = vld [vmem:[#allocation9 + $0x48] sm:$0xff]  ;;  %v278_v54 = vld [vmem:[#allocation9 + $0x50] sm:$0xff]  ;;  %v279_v55 = vld [vmem:[#allocation9 + $0x58] sm:$0xff]  ;;  %v286_v16 = vsub.s32 2, %v95_v61 }
  0x65   :  { %509 = vmatprep.subr.bf16.mxu0 %v693_v0  ;;  %520 = vmatpush3.bf16.msra.mxu1 %v519_v21  ;;  %v549_v53 = vpack.c.bf16 %v277_v52, %v276_v51  ;;  %v552_v56 = vpack.c.bf16 %v279_v55, %v278_v54  ;;  %v280_v57 = vld [vmem:[#allocation9 + $0x60] sm:$0xff]  ;;  %v281_v58 = vld [vmem:[#allocation9 + $0x68] sm:$0xff]  ;;  %v84_v63 = vld [vmem:[#allocation4] sm:$0x7] }
  0x66   :  { %521 = vmatprep.subr.bf16.mxu1 %v693_v0  ;;  %v555_v59 = vpack.c.bf16 %v281_v58, %v280_v57  ;;  %v282_v7 = vld [vmem:[#allocation9 + $0x70] sm:$0xff]  ;;  %v283_v8 = vld [vmem:[#allocation9 + $0x78] sm:$0xff]  ;;  %v194_v11 = vrot.slane %v84_v63, %v193_v10  ;;  %v287_v17 = vrot.slane %v84_v63, %v286_v16 }
  0x67   :  { %v558_v9 = vpack.c.bf16 %v283_v8, %v282_v7 }
  0x68   :  { %511 = vmatpush3.bf16.msra.mxu0 %v510_v22 }
  0x69   :  { %536 = vmatprep.subr.bf16.mxu0 %v693_v0  ;;  %523 = vmatpush3.bf16.msra.mxu1 %v522_v25 }
  0x6a   :  { %524 = vmatprep.subr.bf16.mxu1 %v693_v0 }
  0x6b   :  { %428 = vmatmul.mubr.msk.f32.vlgmr.msra.gmra.mrb[0].mxu0 %vm98_vm1, %v85_v26 }
  0x6c   :  { %497 = vmatprep.mubr.msk.f32.mxu0 %vm694_vm0, %v695_v1  ;;  %538 = vmatpush3.bf16.msra.mxu0 %v537_v42  ;;  %v97_v1 = vrot.slane %v84_v63, %v96_v62 }
  0x6d   :  { %526 = vmatpush3.bf16.msra.mxu1 %v525_v29  ;;  %539 = vmatprep.subr.bf16.mxu0 %v693_v0 }
  0x6e   :  { %527 = vmatprep.subr.bf16.mxu1 %v693_v0 }
  0x70   :  { %541 = vmatpush3.bf16.msra.mxu0 %v540_v44 }
  0x71   :  { %529 = vmatpush3.bf16.msra.mxu1 %v528_v32  ;;  %542 = vmatprep.subr.bf16.mxu0 %v693_v0 }
  0x72   :  { %530 = vmatprep.subr.bf16.mxu1 %v693_v0 }
  0x74   :  { %544 = vmatpush3.bf16.msra.mxu0 %v543_v47 }
  0x75   :  { %532 = vmatpush3.bf16.msra.mxu1 %v531_v35  ;;  %545 = vmatprep.subr.bf16.mxu0 %v693_v0 }
  0x76   :  { %533 = vmatprep.subr.bf16.mxu1 %v693_v0 }
  0x78   :  { %547 = vmatpush3.bf16.msra.mxu0 %v546_v50 }
  0x79   :  { %535 = vmatpush3.bf16.msra.mxu1 %v534_v38  ;;  %548 = vmatprep.subr.bf16.mxu0 %v693_v0 }
  0x7c   :  { %550 = vmatpush3.bf16.msra.mxu0 %v549_v53 }
  0x7d   :  { %551 = vmatprep.subr.bf16.mxu0 %v693_v0 }
  0x80   :  { %553 = vmatpush3.bf16.msra.mxu0 %v552_v56 }
  0x81   :  { %554 = vmatprep.subr.bf16.mxu0 %v693_v0 }
  0x84   :  { %556 = vmatpush3.bf16.msra.mxu0 %v555_v59 }
  0x85   :  { %557 = vmatprep.subr.bf16.mxu0 %v693_v0 }
  0x88   :  { %559 = vmatpush3.bf16.msra.mxu0 %v558_v9 }
 0x13e   :  { %v168_v2 = vpop.f32.mrb[0].mxu0 }
 0x13f   :  { %v169_v3 = vadd.f32 %v168_v2, %v97_v1  ;;  %v429_v4 = vpop.f32.mrb[1].mxu0 }
 0x141   :  { %v173_v5 = vmul.f32 0.25, %v169_v3  ;;  %vm172_vm2 = vcmp.ge.f32.partialorder %v169_v3, 0.0 }
 0x143   :  { %v174_v6 = vsel %vm172_vm2, %v169_v3, %v173_v5 }
 0x144   :  { %463 = vmatmul.mubr.f32.vlgmr.msra.gmra.mrb[0].mxu1 %v174_v6 }
 0x217   :  { %v261_v12 = vpop.f32.mrb[0].mxu1 }
 0x218   :  { %v262_v0 = vadd.f32 %v261_v12, %v194_v11  ;;  %v464_v13 = vpop.f32.mrb[1].mxu1 }
 0x21a   :  { %vm265_vm3 = vcmp.ge.f32.partialorder %v262_v0, 0.0  ;;  %v266_v14 = vmul.f32 0.25, %v262_v0 }
 0x21c   :  { %v267_v15 = vsel %vm265_vm3, %v262_v0, %v266_v14 }
 0x21d   :  { %498 = vmatmul.mubr.f32.vlgmr.msra.gmra.mrb[2].mxu0 %v267_v15 }
 0x2f0   :  { %v354_v18 = vpop.f32.mrb[2].mxu0 }
 0x2f1   :  { %v355_v19 = vadd.f32 %v354_v18, %v287_v17  ;;  %v499_v20 = vpop.f32.mrb[3].mxu0 }
 0x2f3   :  { %359 = vst.msk [vmem:[%s826_s5] sm:$0xff] %vm358_vm4, %v355_v19 }
 0x2f4   :  { %364 = vsyncpa [#allocation3], 1 }
 0x2f5   :  { %365 = vsyncpa [#allocation5], 1 }
 0x2f6   :  { %366 = vsyncpa [#allocation8], 1 }

</bundles_post_ra>
